<compile_context>
chip_gen: v7x
topology: tpu7x:2x2x1
jax: 0.10.0
libtpu: 0.0.40
codegen_flags: <defaults>
</compile_context>

<pallas_src>
import functools

import jax
import jax.numpy as jnp
from jax.experimental import pallas as pl
from jax.experimental.pallas import tpu as pltpu


def _cdiv(a, b):
    return -(-a // b)


def _round_up(x, m):
    return _cdiv(x, m) * m


def _row_ce0(x):
    """-log_softmax(x)[:, 0] for an f32 (T, C) tile, as a (T, 1) column."""
    m = jnp.max(x, axis=-1, keepdims=True)
    lse = jnp.log(jnp.sum(jnp.exp(x - m), axis=-1, keepdims=True)) + m
    return lse - x[:, 0:1]


def _ce_sum_kernel(x_ref, out_ref, *, n_rows, tile_n):
    """Per-tile SUM of row losses; tail rows past n_rows are masked out."""
    i = pl.program_id(0)
    x = x_ref[...].astype(jnp.float32)                       # (T, C)
    loss = _row_ce0(x)                                        # (T, 1)
    row = jax.lax.broadcasted_iota(jnp.int32, (tile_n, 1), 0) + i * tile_n
    loss = jnp.where(row < n_rows, loss, 0.0)                 # mask tail garbage
    part = jnp.sum(loss, axis=0, keepdims=True)               # (1, 1)
    out_ref[...] = jnp.broadcast_to(part, (8, 128))           # lane-dense store


def _ce_rows_kernel(x_ref, out_ref):
    """Per-row losses for reduction='none'."""
    x = x_ref[...].astype(jnp.float32)
    out_ref[...] = _row_ce0(x)


def _pick_tile_rows(n, c, in_itemsize):
    """Rows per block: ~2 MiB of input per block (roofline plateau), capped so
    large N still produces >= ~8 grid steps, floored at the sublane multiple."""
    min_rows = max(8, 32 // max(1, in_itemsize))          # 8 f32 / 16 bf16 / 32 int8
    target_bytes = 2 * 1024 * 1024
    by_budget = (target_bytes // max(1, c * in_itemsize)) // min_rows * min_rows
    by_budget = max(min_rows, by_budget)
    by_split = max(128, _round_up(max(1, _cdiv(n, 8)), min_rows))
    rows = max(min_rows, min(by_budget, by_split))
    if rows >= 128:
        rows = rows // 128 * 128
    return int(rows)


def contrastive_loss(inputs, reduction="mean"):
    """Pallas equivalent of ContrastiveLoss(reduction).forward(inputs)."""
    assert inputs.ndim == 2, "inputs must be [batch, num_classes] logits"
    n, c = inputs.shape
    assert n > 0 and c > 0
    if reduction not in ("mean", "sum", "none"):
        raise ValueError(f"unsupported reduction: {reduction!r}")

    tile_n = _pick_tile_rows(n, c, inputs.dtype.itemsize)
    num_tiles = _cdiv(n, tile_n)

    in_bytes = n * c * inputs.dtype.itemsize
    compiler_params = pltpu.CompilerParams(
        dimension_semantics=("parallel",),
        vmem_limit_bytes=32 * 1024 * 1024,
    )

    if reduction in ("mean", "sum"):
        sums = pl.pallas_call(
            functools.partial(_ce_sum_kernel, n_rows=n, tile_n=tile_n),
            out_shape=jax.ShapeDtypeStruct((num_tiles * 8, 128), jnp.float32),
            grid=(num_tiles,),
            in_specs=[pl.BlockSpec((tile_n, c), lambda i: (i, 0))],
            out_specs=pl.BlockSpec((8, 128), lambda i: (i, 0)),
            compiler_params=compiler_params,
            cost_estimate=pl.CostEstimate(
                flops=5 * n * c,
                transcendentals=n * c,
                bytes_accessed=in_bytes + num_tiles * 8 * 128 * 4,
            ),
        )(inputs)
        total = jnp.sum(sums[::8, 0])               # one partial sum per tile
        if reduction == "sum":
            return total
        return total / jnp.float32(n)

    # reduction == "none": per-row losses (padded rows are sliced off, never
    # consumed by any reduction).
    padded_rows = num_tiles * tile_n
    per_row = pl.pallas_call(
        _ce_rows_kernel,
        out_shape=jax.ShapeDtypeStruct((padded_rows, 1), jnp.float32),
        grid=(num_tiles,),
        in_specs=[pl.BlockSpec((tile_n, c), lambda i: (i, 0))],
        out_specs=pl.BlockSpec((tile_n, 1), lambda i: (i, 0)),
        compiler_params=compiler_params,
        cost_estimate=pl.CostEstimate(
            flops=5 * n * c,
            transcendentals=n * c,
            bytes_accessed=in_bytes + padded_rows * 4,
        ),
    )(inputs)
    return per_row[:n, 0]


def _reference(inputs, reduction="mean"):
    logp = jax.nn.log_softmax(inputs.astype(jnp.float32), axis=-1)
    per_row = -logp[:, 0]
    if reduction == "mean":
        return jnp.mean(per_row)
    if reduction == "sum":
        return jnp.sum(per_row)
    return per_row


if __name__ == "__main__":
    key = jax.random.PRNGKey(0)
    k1, k2, k3 = jax.random.split(key, 3)

    # Demo-sized: 8 "anchor vs candidates" logit rows, 32 candidate classes.
    x_small = jax.random.normal(k1, (8, 32), dtype=jnp.float32)
    loss = contrastive_loss(x_small, reduction="mean")
    jax.block_until_ready(loss)
    assert jnp.allclose(loss, _reference(x_small, "mean"), atol=1e-5, rtol=1e-5), loss
    assert jnp.allclose(contrastive_loss(x_small, "sum"),
                        _reference(x_small, "sum"), atol=1e-4)
    assert jnp.allclose(contrastive_loss(x_small, "none"),
                        _reference(x_small, "none"), atol=1e-5)

    # Multi-tile grid with an overhanging (ragged) tail block, bf16 input.
    x_big = jax.random.normal(k2, (2300, 64), dtype=jnp.float32).astype(jnp.bfloat16)
    loss_big = contrastive_loss(x_big, reduction="mean")
    jax.block_until_ready(loss_big)
    assert jnp.allclose(loss_big, _reference(x_big, "mean"), atol=1e-4, rtol=1e-4)
    assert jnp.allclose(contrastive_loss(x_big, "sum"),
                        _reference(x_big, "sum"), atol=1e-2, rtol=1e-4)
    assert jnp.allclose(contrastive_loss(x_big, "none"),
                        _reference(x_big, "none"), atol=1e-4, rtol=1e-4)

    # Wider-class case (C > 128), f32, non-multiple-of-tile batch.
    x_mid = jax.random.normal(k3, (260, 160), dtype=jnp.float32)
    assert jnp.allclose(contrastive_loss(x_mid, "mean"),
                        _reference(x_mid, "mean"), atol=1e-5, rtol=1e-5)
    assert jnp.allclose(contrastive_loss(x_mid, "none"),
                        _reference(x_mid, "none"), atol=1e-5, rtol=1e-5)

    print("KERNEL_OK")
</pallas_src>

<mosaic_0001>
module attributes {stable_mosaic.version = 11 : i64} {
  func.func @_ce_sum_kernel(%arg0: i32, %arg1: memref<128x32xf32, #tpu.memory_space<vmem>>, %arg2: memref<8x128xf32, #tpu.memory_space<vmem>>) attributes {dimension_semantics = [#tpu.dimension_semantics<parallel>], iteration_bounds = array<i64: 1>, scalar_prefetch = 0 : i64, scratch_operands = 0 : i64, tpu.core_type = #tpu.core_type<tc>, window_params = [{transform_indices = @transform_0, window_bounds = array<i64: 128, 32>}, {transform_indices = @transform_1, window_bounds = array<i64: 8, 128>}]} {
    %c0 = arith.constant 0 : index
    %c0_0 = arith.constant 0 : index
    %0 = vector.load %arg1[%c0, %c0_0] : memref<128x32xf32, #tpu.memory_space<vmem>>, vector<128x32xf32>
    %cst = arith.constant dense<0xFF800000> : vector<128xf32>
    %1 = vector.multi_reduction <maximumf>, %0, %cst [1] : vector<128x32xf32> to vector<128xf32>
    %2 = vector.shape_cast %1 : vector<128xf32> to vector<128x1xf32>
    %3 = vector.broadcast %2 : vector<128x1xf32> to vector<128x32xf32>
    %4 = arith.subf %0, %3 : vector<128x32xf32>
    %5 = math.exp %4 : vector<128x32xf32>
    %cst_1 = arith.constant dense<0.000000e+00> : vector<128xf32>
    %6 = vector.multi_reduction <add>, %5, %cst_1 [1] : vector<128x32xf32> to vector<128xf32>
    %7 = vector.shape_cast %6 : vector<128xf32> to vector<128x1xf32>
    %8 = math.log %7 : vector<128x1xf32>
    %9 = arith.addf %8, %2 : vector<128x1xf32>
    %10 = vector.extract_strided_slice %0 {offsets = [0, 0], sizes = [128, 1], strides = [1, 1]} : vector<128x32xf32> to vector<128x1xf32>
    %11 = arith.subf %9, %10 : vector<128x1xf32>
    %12 = tpu.iota {dimensions = array<i32: 0>} : vector<128x1xi32>
    %c128_i32 = arith.constant 128 : i32
    %13 = arith.muli %arg0, %c128_i32 : i32
    %14 = vector.broadcast %13 : i32 to vector<128x1xi32>
    %15 = arith.addi %12, %14 : vector<128x1xi32>
    %c8_i32 = arith.constant 8 : i32
    %16 = vector.broadcast %c8_i32 : i32 to vector<128x1xi32>
    %17 = arith.cmpi slt, %15, %16 : vector<128x1xi32>
    %cst_2 = arith.constant 0.000000e+00 : f32
    %18 = vector.broadcast %cst_2 : f32 to vector<128x1xf32>
    %19 = arith.select %17, %11, %18 : vector<128x1xi1>, vector<128x1xf32>
    %cst_3 = arith.constant dense<0.000000e+00> : vector<1xf32>
    %20 = vector.multi_reduction <add>, %19, %cst_3 [0] : vector<128x1xf32> to vector<1xf32>
    %21 = vector.shape_cast %20 : vector<1xf32> to vector<1x1xf32>
    %22 = vector.shape_cast %21 : vector<1x1xf32> to vector<1x1xf32>
    %23 = vector.broadcast %22 : vector<1x1xf32> to vector<8x128xf32>
    %c0_4 = arith.constant 0 : index
    %c0_5 = arith.constant 0 : index
    %24 = vector.load %arg2[%c0_4, %c0_5] : memref<8x128xf32, #tpu.memory_space<vmem>>, vector<8x128xf32>
    tpu.vector_store %arg2[%c0_4, %c0_5], %23 {strides = array<i32>} : memref<8x128xf32, #tpu.memory_space<vmem>>, vector<8x128xf32>,
    return
  }
  func.func @transform_0(%arg0: i32) -> (i32, i32) {
    %c0_i32 = arith.constant 0 : i32
    %c0_i32_0 = arith.constant 0 : i32
    return %arg0, %c0_i32 : i32, i32
  }
  func.func @transform_1(%arg0: i32) -> (i32, i32) {
    %c0_i32 = arith.constant 0 : i32
    %c0_i32_0 = arith.constant 0 : i32
    return %arg0, %c0_i32 : i32, i32
  }
}

</mosaic_0001>

<bundles_post_ra>
// kernel: tpu_custom_call.1
= control target key start
LH: loop header
LB: loop body
LE: loop exit
PB: predicated region body
PF: predicated region fallthrough
CT: control target
= control target key end

     0   :  { %6 = vsyncpa [#allocation3], 0  ;;  %s472_s0 = inlined_call_operand.hbm [shape: f32[8,32], index: 0, kind: input, shape index: {}]   ;;  %s473_s1 = inlined_call_operand.hbm [shape: f32[8,128], index: 1, kind: output, shape index: {}]  }
   0x1   :  { %7 = vsyncpa [#allocation4], 0 }
   0x2   :  { %12 = vsyncadd [#allocation3], 1920  ;;  %s433_s6 = smov [#allocation2]   ;;  %s385_s10 = scalar_lea.hbm %s472_s0, 128 }
   0x3   :  { %s13_s7 = sshll.u32 %s433_s6, 4  ;;  %p386_p0 = scmp.ne.s32.totalorder %s472_s0, %s385_s10  ;;  %s14_s7 = int_to_ptr.vmem [resolvable:$true] %s13_s7 }
   0x4   :  { %p389_p1 = scmp.lt.u32.totalorder %s385_s10, %s472_s0 }
   0x6   :  { %p391_p2 = pnand %p389_p1, %p386_p0 }
   0x8   :  { %394 = shalt.err (!%p391_p2)
}
   0x9   :  { %s395_s15 = scalar_lea.vmem %s14_s7, 128  ;;  %s399_s16 = scalar_lea.vmem %s14_s7, 2048 }
   0xa   :  { %p396_p3 = scmp.ne.s32.totalorder %s14_s7, %s395_s15  ;;  %p400_p4 = scmp.lt.s32.totalorder %s14_s7, %s14_s7 }
   0xb   :  { %p401_p5 = scmp.lt.s32.totalorder %s399_s16, %s395_s15 }
   0xd   :  { %p402_p6 = por %p401_p5, %p400_p4 }
   0xf   :  { %p403_p7 = pnand %p402_p6, %p396_p3 }
  0x11   :  { %406 = shalt.err (!%p403_p7)
}
  0x12   :  { %s434_s17 = smov 128   ;;  %s435_s18 = smov 8  }
  0x13   :  { %19 = dma.hbm_to_vmem [thread:$0]  %s472_s0, 128, %s14_s7, [#allocation3], %s434_s17, %s434_s17, %s435_s18  }
  0x14   :  { %429 = dma.done.wait [#allocation3], 2048  }
  0x15   :  { %430 = vsyncadd [#allocation3], 4294965248  ;;  %vm39_vm0 = vcmask 261120   ;;  %v23_v0 = vld [vmem:[#allocation2] sm:$0xff]  ;;  %v436_v7 = vmov 0   ;;  %vm315_vm1 = vcmask 7168  }
  0x16   :  { %v40_v1 = vsel %vm39_vm0, %v23_v0, -inf  ;;  %379 = vset.pattern.permute.xlu1 %v436_v7  ;;  %380 = vset.pattern.permute.xlu0 %v436_v7  ;;  %s437_s0 = smov [#allocation5]  }
  0x17   :  { %41 = vmax.xlane.f32.xlu0 %v40_v1  ;;  %s365_s21 = sshll.u32 %s437_s0, 4  ;;  %s366_s21 = int_to_ptr.vmem [resolvable:$true] %s365_s21 }
  0x18   :  { %s407_s22 = scalar_lea.vmem %s366_s21, 128  ;;  %p412_p9 = scmp.lt.s32.totalorder %s366_s21, %s366_s21 }
  0x19   :  { %p408_p8 = scmp.ne.s32.totalorder %s366_s21, %s407_s22  ;;  %p413_p10 = scmp.lt.s32.totalorder %s407_s22, %s407_s22 }
  0x1b   :  { %p414_p11 = por %p413_p10, %p412_p9 }
  0x1d   :  { %p415_p12 = pnand %p414_p11, %p408_p8 }
  0xa4   :  { %v42_v2 = vpop.xlane.xlu0 %41 }
  0xa5   :  { %v88_v3 = vsub.f32 %v23_v0, %v42_v2 }
  0xa7   :  { %v104_v4 = vmul.f32 1.442695, %v88_v3 }
  0xa9   :  { %381 = vpow2.f32 %v104_v4 }
  0xb3   :  { %v382_v5 = vpop.eup %381 }
  0xb4   :  { %v136_v6 = vsel %vm39_vm0, %v382_v5, 0.0 }
  0xb5   :  { %137 = vadd.xlane.f32.xlu0 %v136_v6 }
 0x142   :  { %v138_v8 = vpop.xlane.xlu0 %137 }
 0x143   :  { %383 = vlog2.f32 %v138_v8 }
 0x14d   :  { %v384_v9 = vpop.eup %383 }
 0x14e   :  { %v185_v10 = vmul.f32 0.6931472, %v384_v9 }
 0x150   :  { %v216_v11 = vadd.f32 %v185_v10, %v42_v2 }
 0x152   :  { %v232_v12 = vsub.f32 %v216_v11, %v23_v0 }
 0x154   :  { %v316_v13 = vsel %vm315_vm1, %v232_v12, 0.0 }
 0x155   :  { %v347_v14 = vrot.slane %v316_v13, 4 }
 0x157   :  { %v348_v15 = vadd.f32 %v347_v14, %v316_v13 }
 0x159   :  { %v349_v16 = vrot.slane %v348_v15, 2 }
 0x15b   :  { %v350_v17 = vadd.f32 %v349_v16, %v348_v15 }
 0x15d   :  { %v351_v18 = vrot.slane %v350_v17, 1 }
 0x15f   :  { %v352_v19 = vadd.f32 %v351_v18, %v350_v17 }
 0x161   :  { %355 = vperm.xlu1 %379, %v352_v19  }
 0x1e0   :  { %v356_v20 = vpop.permute.xlu1 %355 }
 0x1e1   :  { %358 = vst [vmem:[#allocation5] sm:$0xff] %v356_v20 }
 0x1e2   :  { %418 = shalt.err (!%p415_p12)
}
 0x1e3   :  { %s419_s25 = scalar_lea.hbm %s473_s1, 128 }
 0x1e4   :  { %p420_p13 = scmp.ne.s32.totalorder %s473_s1, %s419_s25  ;;  %p423_p0 = scmp.lt.u32.totalorder %s419_s25, %s473_s1 }
 0x1e6   :  { %p425_p1 = pnand %p423_p0, %p420_p13 }
 0x1e8   :  { %428 = shalt.err (!%p425_p1)
}
 0x1e9   :  { %368 = dma.vmem_to_hbm [thread:$0]  %s366_s21, 128, %s473_s1, [#allocation4]  }
 0x1ea   :  { %431 = dma.done.wait [#allocation4], 128  }
 0x1eb   :  { %432 = vsyncadd [#allocation4], 4294967168 }
 0x1ec   :  { %372 = vsyncpa [#allocation3], 1 }
 0x1ed   :  { %373 = vsyncpa [#allocation4], 1 }

</bundles_post_ra>
